<compile_context>
chip_gen: v6e
topology: v6e:2x2x1
jax: 0.10.0
libtpu: 0.0.40
codegen_flags: <defaults>
</compile_context>

<pallas_src>
import functools

import jax
import jax.numpy as jnp
from jax.experimental import pallas as pl
from jax.experimental.pallas import tpu as pltpu


def _round_up(x, m):
    return ((x + m - 1) // m) * m


def _round_down(x, m):
    return (x // m) * m


def gconv_kernel(p_ref, x_ref, o_ref, *, bc):
    # p_ref: (V, V)       propagation matrix P = (adj^T)^order for this batch
    # x_ref: (BC, V, TL)  native-layout block of x (channels, nodes, lanes)
    # o_ref: (BC, V, TL)
    p = p_ref[...]
    for c in range(bc):  # static unroll; BC is small
        o_ref[c] = jnp.dot(
            p, x_ref[c], preferred_element_type=jnp.float32
        ).astype(o_ref.dtype)


def gconv(dynadj, x, order=4):
    """Pallas implementation of Gconv.forward(dynadj, x).

    dynadj: (N, V, V)
    x:      (N, C, V, L)
    returns (N, C, V, L)
    """
    N, C, V, L = x.shape
    assert dynadj.shape == (N, V, V)

    if order <= 0:
        return x

    # --- P = (adj^T)^order on the tiny (N, V, V) array (XLA, f32). ---------
    adjT = jnp.swapaxes(dynadj, 1, 2).astype(jnp.float32)
    P = adjT
    for _ in range(order - 1):
        P = jnp.matmul(P, adjT)  # batched (N, V, V) @ (N, V, V)
    # Match the kernel's matmul input dtype; contraction depth is only V so
    # the downcast (if x is bf16) is benign.
    P = P.astype(x.dtype)

    # --- Tile sizing from the per-generation VMEM budget. ------------------
    itemsize = jnp.dtype(x.dtype).itemsize
    try:
        vmem_cap = pltpu.get_tpu_info().vmem_capacity_bytes
    except Exception:  # conservative fallback (v7x-sized VMEM)
        vmem_cap = 64 * 1024 * 1024
    # ~48 MiB usable on v7x (64 MiB VMEM), ~96 MiB on v5e/v6e (128 MiB).
    vmem_budget = int(min(vmem_cap * 3 // 4, 96 * 1024 * 1024))

    # Live VMEM ~= 2 double-buffered copies of (x block + out block) + P.
    reserve = 2 * V * V * itemsize + 2 * 1024 * 1024
    block_budget = max((vmem_budget - reserve) // 4, 128 * 1024)
    # Big enough to amortize per-step overhead, small enough to double-buffer.
    target_block = min(block_budget, 4 * 1024 * 1024)

    row_bytes = V * itemsize
    if L >= 128:
        # Lane-dense tile: multiple of 128 (unmasked vst), sized to hit the
        # per-block target with BC=1, never padded past L's 128-roundup.
        tl = min(_round_up(L, 128),
                 max(128, _round_down(target_block // row_bytes, 128)))
    else:
        tl = L  # equals the full array dim -> allowed by the (8,128) rule
    num_l = pl.cdiv(L, tl)

    # Channel block fills the remaining per-block target (partial last block
    # handled by Pallas masking).
    bc = max(1, min(C, target_block // (row_bytes * tl)))
    num_c = pl.cdiv(C, bc)

    grid = (N, num_c, num_l)

    out = pl.pallas_call(
        functools.partial(gconv_kernel, bc=bc),
        out_shape=jax.ShapeDtypeStruct((N, C, V, L), x.dtype),
        grid_spec=pltpu.PrefetchScalarGridSpec(
            num_scalar_prefetch=0,
            grid=grid,
            in_specs=[
                # P: one (V, V) block per batch; same block across the
                # channel/lane grid axes -> DMA'd once per batch element.
                pl.BlockSpec((pl.Squeezed(), V, V), lambda n, c, l: (n, 0, 0)),
                # x: native-layout (BC, V, TL) block, no wrapper relayout.
                pl.BlockSpec((pl.Squeezed(), bc, V, tl),
                             lambda n, c, l: (n, c, 0, l)),
            ],
            out_specs=pl.BlockSpec((pl.Squeezed(), bc, V, tl),
                                   lambda n, c, l: (n, c, 0, l)),
        ),
        compiler_params=pltpu.CompilerParams(
            # All grid axes are independent -> megacore may shard any of them.
            dimension_semantics=("parallel", "parallel", "parallel"),
            vmem_limit_bytes=vmem_budget,
        ),
    )(P, x)

    return out


def gconv_ref(dynadj, x, order=4):
    """Pure-JAX reference mirroring the PyTorch loop."""
    for _ in range(order):
        x = jnp.einsum('ncvl,nvw->ncwl', x, dynadj)
    return x


if __name__ == "__main__":
    # Small deterministic inputs: N=2 batches, C=4 channels, V=16 nodes,
    # L=32 sequence length.
    key = jax.random.PRNGKey(0)
    k_adj, k_x = jax.random.split(key)

    N, C, V, L = 2, 4, 16, 32
    ORDER = 4

    # Keep adjacency values modest so order-4 products stay well-conditioned.
    dynadj = jax.random.uniform(k_adj, (N, V, V), dtype=jnp.float32) * 0.2
    x = jax.random.normal(k_x, (N, C, V, L), dtype=jnp.float32)

    out = gconv(dynadj, x, order=ORDER)
    out = jax.block_until_ready(out)

    ref = gconv_ref(dynadj, x, order=ORDER)
    assert out.shape == (N, C, V, L)
    # Tolerance covers the (adj^T)^order reassociation vs the sequential ref.
    assert jnp.allclose(out, ref, atol=1e-4, rtol=1e-3), "mismatch vs reference"

    print("KERNEL_OK")
</pallas_src>

<mosaic_0001>
module attributes {stable_mosaic.version = 11 : i64} {
  func.func @gconv_kernel(%arg0: i32, %arg1: i32, %arg2: i32, %arg3: memref<1x16x16xf32, #tpu.memory_space<vmem>>, %arg4: memref<1x4x16x32xf32, #tpu.memory_space<vmem>>, %arg5: memref<1x4x16x32xf32, #tpu.memory_space<vmem>>) attributes {dimension_semantics = [#tpu.dimension_semantics<parallel>, #tpu.dimension_semantics<parallel>, #tpu.dimension_semantics<parallel>], iteration_bounds = array<i64: 2, 1, 1>, scalar_prefetch = 0 : i64, scratch_operands = 0 : i64, tpu.core_type = #tpu.core_type<tc>, window_params = [{transform_indices = @transform_0, window_bounds = array<i64: 1, 16, 16>}, {transform_indices = @transform_1, window_bounds = array<i64: 1, 4, 16, 32>}, {transform_indices = @transform_2, window_bounds = array<i64: 1, 4, 16, 32>}]} {
    %c0 = arith.constant 0 : index
    %c0_0 = arith.constant 0 : index
    %c0_1 = arith.constant 0 : index
    %0 = vector.load %arg3[%c0, %c0_0, %c0_1] : memref<1x16x16xf32, #tpu.memory_space<vmem>>, vector<1x16x16xf32>
    %1 = vector.shape_cast %0 : vector<1x16x16xf32> to vector<16x16xf32>
    %c0_2 = arith.constant 0 : index
    %c0_3 = arith.constant 0 : index
    %c0_4 = arith.constant 0 : index
    %c0_5 = arith.constant 0 : index
    %2 = vector.load %arg4[%c0_2, %c0_3, %c0_4, %c0_5] : memref<1x4x16x32xf32, #tpu.memory_space<vmem>>, vector<1x1x16x32xf32>
    %3 = vector.shape_cast %2 : vector<1x1x16x32xf32> to vector<16x32xf32>
    %cst = arith.constant dense<0.000000e+00> : vector<16x32xf32>
    %4 = tpu.matmul %1, %3, %cst {dimension_numbers = #tpu.dot_dimension_numbers<[1], [0], [0], [1], [0, 0, 1, 1], [], []>} : vector<16x16xf32>, vector<16x32xf32>, vector<16x32xf32> -> vector<16x32xf32>
    %c0_6 = arith.constant 0 : index
    %c0_7 = arith.constant 0 : index
    %c0_8 = arith.constant 0 : index
    %c0_9 = arith.constant 0 : index
    %5 = vector.load %arg5[%c0_6, %c0_7, %c0_8, %c0_9] : memref<1x4x16x32xf32, #tpu.memory_space<vmem>>, vector<1x1x16x32xf32>
    %6 = vector.shape_cast %5 : vector<1x1x16x32xf32> to vector<16x32xf32>
    %7 = vector.shape_cast %4 : vector<16x32xf32> to vector<1x1x16x32xf32>
    tpu.vector_store %arg5[%c0_6, %c0_7, %c0_8, %c0_9], %7 {strides = array<i32>} : memref<1x4x16x32xf32, #tpu.memory_space<vmem>>, vector<1x1x16x32xf32>,
    %c0_10 = arith.constant 0 : index
    %c1 = arith.constant 1 : index
    %c0_11 = arith.constant 0 : index
    %c0_12 = arith.constant 0 : index
    %8 = vector.load %arg4[%c0_10, %c1, %c0_11, %c0_12] : memref<1x4x16x32xf32, #tpu.memory_space<vmem>>, vector<1x1x16x32xf32>
    %9 = vector.shape_cast %8 : vector<1x1x16x32xf32> to vector<16x32xf32>
    %cst_13 = arith.constant dense<0.000000e+00> : vector<16x32xf32>
    %10 = tpu.matmul %1, %9, %cst_13 {dimension_numbers = #tpu.dot_dimension_numbers<[1], [0], [0], [1], [0, 0, 1, 1], [], []>} : vector<16x16xf32>, vector<16x32xf32>, vector<16x32xf32> -> vector<16x32xf32>
    %c0_14 = arith.constant 0 : index
    %c1_15 = arith.constant 1 : index
    %c0_16 = arith.constant 0 : index
    %c0_17 = arith.constant 0 : index
    %11 = vector.load %arg5[%c0_14, %c1_15, %c0_16, %c0_17] : memref<1x4x16x32xf32, #tpu.memory_space<vmem>>, vector<1x1x16x32xf32>
    %12 = vector.shape_cast %11 : vector<1x1x16x32xf32> to vector<16x32xf32>
    %13 = vector.shape_cast %10 : vector<16x32xf32> to vector<1x1x16x32xf32>
    tpu.vector_store %arg5[%c0_14, %c1_15, %c0_16, %c0_17], %13 {strides = array<i32>} : memref<1x4x16x32xf32, #tpu.memory_space<vmem>>, vector<1x1x16x32xf32>,
    %c0_18 = arith.constant 0 : index
    %c2 = arith.constant 2 : index
    %c0_19 = arith.constant 0 : index
    %c0_20 = arith.constant 0 : index
    %14 = vector.load %arg4[%c0_18, %c2, %c0_19, %c0_20] : memref<1x4x16x32xf32, #tpu.memory_space<vmem>>, vector<1x1x16x32xf32>
    %15 = vector.shape_cast %14 : vector<1x1x16x32xf32> to vector<16x32xf32>
    %cst_21 = arith.constant dense<0.000000e+00> : vector<16x32xf32>
    %16 = tpu.matmul %1, %15, %cst_21 {dimension_numbers = #tpu.dot_dimension_numbers<[1], [0], [0], [1], [0, 0, 1, 1], [], []>} : vector<16x16xf32>, vector<16x32xf32>, vector<16x32xf32> -> vector<16x32xf32>
    %c0_22 = arith.constant 0 : index
    %c2_23 = arith.constant 2 : index
    %c0_24 = arith.constant 0 : index
    %c0_25 = arith.constant 0 : index
    %17 = vector.load %arg5[%c0_22, %c2_23, %c0_24, %c0_25] : memref<1x4x16x32xf32, #tpu.memory_space<vmem>>, vector<1x1x16x32xf32>
    %18 = vector.shape_cast %17 : vector<1x1x16x32xf32> to vector<16x32xf32>
    %19 = vector.shape_cast %16 : vector<16x32xf32> to vector<1x1x16x32xf32>
    tpu.vector_store %arg5[%c0_22, %c2_23, %c0_24, %c0_25], %19 {strides = array<i32>} : memref<1x4x16x32xf32, #tpu.memory_space<vmem>>, vector<1x1x16x32xf32>,
    %c0_26 = arith.constant 0 : index
    %c3 = arith.constant 3 : index
    %c0_27 = arith.constant 0 : index
    %c0_28 = arith.constant 0 : index
    %20 = vector.load %arg4[%c0_26, %c3, %c0_27, %c0_28] : memref<1x4x16x32xf32, #tpu.memory_space<vmem>>, vector<1x1x16x32xf32>
    %21 = vector.shape_cast %20 : vector<1x1x16x32xf32> to vector<16x32xf32>
    %cst_29 = arith.constant dense<0.000000e+00> : vector<16x32xf32>
    %22 = tpu.matmul %1, %21, %cst_29 {dimension_numbers = #tpu.dot_dimension_numbers<[1], [0], [0], [1], [0, 0, 1, 1], [], []>} : vector<16x16xf32>, vector<16x32xf32>, vector<16x32xf32> -> vector<16x32xf32>
    %c0_30 = arith.constant 0 : index
    %c3_31 = arith.constant 3 : index
    %c0_32 = arith.constant 0 : index
    %c0_33 = arith.constant 0 : index
    %23 = vector.load %arg5[%c0_30, %c3_31, %c0_32, %c0_33] : memref<1x4x16x32xf32, #tpu.memory_space<vmem>>, vector<1x1x16x32xf32>
    %24 = vector.shape_cast %23 : vector<1x1x16x32xf32> to vector<16x32xf32>
    %25 = vector.shape_cast %22 : vector<16x32xf32> to vector<1x1x16x32xf32>
    tpu.vector_store %arg5[%c0_30, %c3_31, %c0_32, %c0_33], %25 {strides = array<i32>} : memref<1x4x16x32xf32, #tpu.memory_space<vmem>>, vector<1x1x16x32xf32>,
    return
  }
  func.func @transform_0(%arg0: i32, %arg1: i32, %arg2: i32) -> (i32, i32, i32) {
    %c0_i32 = arith.constant 0 : i32
    %c0_i32_0 = arith.constant 0 : i32
    %c0_i32_1 = arith.constant 0 : i32
    return %arg0, %c0_i32, %c0_i32_0 : i32, i32, i32
  }
  func.func @transform_1(%arg0: i32, %arg1: i32, %arg2: i32) -> (i32, i32, i32, i32) {
    %c0_i32 = arith.constant 0 : i32
    %c0_i32_0 = arith.constant 0 : i32
    return %arg0, %arg1, %c0_i32, %arg2 : i32, i32, i32, i32
  }
  func.func @transform_2(%arg0: i32, %arg1: i32, %arg2: i32) -> (i32, i32, i32, i32) {
    %c0_i32 = arith.constant 0 : i32
    %c0_i32_0 = arith.constant 0 : i32
    return %arg0, %arg1, %c0_i32, %arg2 : i32, i32, i32, i32
  }
}

</mosaic_0001>

<bundles_post_ra>
// kernel: tpu_custom_call.1
= control target key start
LH: loop header
LB: loop body
LE: loop exit
PB: predicated region body
PF: predicated region fallthrough
CT: control target
= control target key end

     0   :  { %7 = vsyncpa [#allocation3], 0  ;;  %s1217_s0 = inlined_call_operand.hbm [shape: f32[2,16,16], index: 0, kind: input, shape index: {}]   ;;  %s1218_s1 = inlined_call_operand.hbm [shape: f32[2,4,16,32], index: 1, kind: input, shape index: {}]   ;;  %s1219_s2 = inlined_call_operand.hbm [shape: f32[2,4,16,32], index: 2, kind: output, shape index: {}]  }
   0x1   :  { %9 = vsyncpa [#allocation3 + $0x1], 0 }
   0x2   :  { %10 = vsyncpa [#allocation6], 0 }
   0x3   :  { %12 = vsyncpa [#allocation6 + $0x1], 0 }
   0x4   :  { %13 = vsyncpa [#allocation4], 0 }
   0x5   :  { %15 = vsyncpa [#allocation4 + $0x1], 0  ;;  %s1021_s9 = smov 0   ;;  %s1023_s10 = smov 0  }
   0x6   :  { %s1025_s11 = smov 0   ;;  %s1027_s12 = smov 0  }
   0x7   :  { %s1029_s13 = smov 0   ;;  %s1031_s14 = smov 0  }
   0x8 LB: > { %s700_s15 = sadd.s32 4294967295, %s997_s14   ;;  %s701_s16 = sadd.s32 4294967294, %s997_s14   ;;  %s997_s14 = sphi %s1031_s14, %s21_s14   ;;  %s993_s13 = sphi %s1029_s13, %s1230_s13   ;;  %s989_s12 = sphi %s1027_s12, %s1229_s12   ;;  %s985_s11 = sphi %s1025_s11, %s1228_s11   ;;  %s981_s10 = sphi %s1023_s10, %s1227_s10   ;;  %s977_s9 = sphi %s1021_s9, %s1226_s9  }
   0x9   : > { %s40_s17 = sadd.s32 1, %s993_s13  ;;  %s47_s18 = sadd.s32 1, %s985_s11 }
   0xa   : > { %p42_p0 = scmp.ge.s32.totalorder %s40_s17, 2  ;;  %p54_p1 = scmp.ne.s32.totalorder %s985_s11, %s981_s10 }
   0xb   : > { %p55_p2 = scmp.eq.s32.totalorder %s997_s14, 0  ;;  %p60_p3 = scmp.ne.s32.totalorder %s981_s10, %s977_s9 }
   0xc   : > { %s1232_s17 = smov (%p42_p0, %s40_s17), 0  ;;  %p61_p5 = scmp.eq.s32.totalorder %s700_s15, 0 }
   0xd   : > { %p1062_p4 = por %p55_p2, %p54_p1  ;;  %s44_s20 = ssub.s32 %s993_s13, %s1232_s17 }
   0xe   : > { %p118_p6 = scmp.eq.s32.totalorder %s700_s15, 1  ;;  %p45_p7 = scmp.eq.s32.totalorder %s44_s20, 0 }
   0xf   : > { %p1068_p8 = por %p61_p5, %p60_p3  ;;  %p124_p10 = scmp.eq.s32.totalorder %s701_s16, 1 }
  0x10   : > { %p1072_p9 = por %p118_p6, %p54_p1  ;;  %p703_p12 = scmp.ge.s32.totalorder %s997_s14, 2 }
  0x11   : > { %s1077_s23 = scalar_select %p45_p7, %s985_s11, %s47_s18  }
  0x12   : > { %p1079_p11 = por %p124_p10, %p60_p3  ;;  %p803_p13 = scmp.lt.s32.totalorder %s997_s14, 2 }
  0x13   : > { %s1086_s25 = sand.u32 1, %s985_s11   ;;  %s739_s27 = sshll.u32 %s993_s13, 8 }
  0x14   : > { %s704_s26 = sshll.u32 %s1086_s25, 4  ;;  %s154_s30 = scalar_lea.hbm %s1217_s0, %s739_s27 }
  0x15   : > { %s148_s3 = scalar_lea.vmem [#allocation2], %s704_s26  ;;  %p1095_p0 = pnand %p803_p13, %p1062_p4 }
  0x16   : > { %s155_s4 = sshll.u32 %s148_s3, 4  ;;  %p710_p1 = scmp.ge.s32.totalorder %s997_s14, 1  ;;  %s156_s4 = int_to_ptr.vmem [resolvable:$true] %s155_s4 }
  0x17   : > { %s145_s6 = scalar_lea.sflag [#allocation3], %s1086_s25  ;;  %p859_p2 = pneg %p1095_p0 }
  0x18   : > { %s870_s7 = scalar_lea.vmem %s156_s4, 256  ;;  %s999_s8 = smov [#allocation2]  }
  0x19   : > { %p871_p3 = scmp.ne.s32.totalorder %s156_s4, %s870_s7  ;;  %s875_s15 = sshll.u32 %s999_s8, 4  ;;  %s876_s15 = int_to_ptr.vmem [resolvable:$false] %s875_s15 }
  0x1a   : > { %s877_s16 = scalar_lea.vmem %s876_s15, 512  ;;  %p878_p4 = scmp.lt.s32.totalorder %s156_s4, %s876_s15 }
  0x1b   : > { %p873_p5 = pnand %p871_p3, %p859_p2  ;;  %p879_p7 = scmp.lt.s32.totalorder %s877_s16, %s870_s7 }
  0x1d   : > { %p874_p6 = pneg %p873_p5  ;;  %p880_p10 = por %p879_p7, %p878_p4 }
  0x1f   : > { %p881_p13 = pnand %p880_p10, %p874_p6 }
  0x21   : > { %884 = shalt.err (!%p881_p13)
}
  0x22   : > { %s1000_s18 = smov 128   ;;  %s1001_s19 = smov 8  }
  0x23   : > { %795 = dma.hbm_to_vmem [thread:$0]  (!%p1095_p0), %s154_s30, 256, %s156_s4, %s145_s6, %s1000_s18, %s1000_s18, %s1001_s19  }
  0x24   : > { %p188_p3 = scmp.lt.s32.totalorder %s997_s14, 3  ;;  %s707_s20 = sshll.u32 %s1086_s25, 6 }
  0x25   : > { %s740_s26 = sshll.u32 %s993_s13, 10  ;;  %s169_s7 = scalar_lea.vmem [#allocation5], %s707_s20 }
  0x26   : > { %p1113_p5 = pnand %p710_p1, %p188_p3  ;;  %s179_s3 = scalar_lea.hbm %s1218_s1, %s740_s26 }
  0x27   : > { %s180_s8 = sshll.u32 %s169_s7, 4  ;;  %s166_s15 = scalar_lea.sflag [#allocation6], %s1086_s25  ;;  %s181_s8 = int_to_ptr.vmem [resolvable:$true] %s180_s8 }
  0x28   : > { %s898_s16 = scalar_lea.vmem %s181_s8, 1024  ;;  %s1002_s30 = smov [#allocation5]  }
  0x29   : > { %p899_p6 = scmp.ne.s32.totalorder %s181_s8, %s898_s16  ;;  %s903_s4 = sshll.u32 %s1002_s30, 4  ;;  %s904_s4 = int_to_ptr.vmem [resolvable:$false] %s903_s4 }
  0x2a   : > { %s905_s6 = scalar_lea.vmem %s904_s4, 2048  ;;  %p906_p1 = scmp.lt.s32.totalorder %s181_s8, %s904_s4 }
  0x2b   : > { %p901_p4 = pnand %p899_p6, %p859_p2  ;;  %p907_p10 = scmp.lt.s32.totalorder %s905_s6, %s898_s16 }
  0x2d   : > { %p902_p7 = pneg %p901_p4  ;;  %p908_p13 = por %p907_p10, %p906_p1 }
  0x2f   : > { %p909_p3 = pnand %p908_p13, %p902_p7 }
  0x31   : > { %912 = shalt.err (!%p909_p3)
}
  0x32   : > { %798 = dma.hbm_to_vmem [thread:$0]  (!%p1095_p0), %s179_s3, 1024, %s181_s8, %s166_s15, %s1000_s18, %s1000_s18, %s1001_s19  }
  0x33   : > { %192 = sbr.rel (%p1113_p5) target bundleno = 281 (0x119), region = 28  ;;  %s1129_s25 = sand.u32 (!%p1113_p5), 1, %s981_s10  }
  0x34   : > { %s711_s20 = sshll.u32 (!%p1113_p5), %s1129_s25, 4  ;;  %s195_s26 = scalar_lea.sflag (!%p1113_p5), [#allocation3], %s1129_s25 }
  0x35   : > { %s198_s28 = scalar_lea.vmem (!%p1113_p5), [#allocation2], %s711_s20 }
  0x38   : > { %964 = dma.done.wait (%p1068_p8), %s195_s26, 256  }
  0x39   : > { %966 = vsyncadd (%p1068_p8), %s195_s26, 4294967040  ;;  %s712_s5 = sshll.u32 %s1129_s25, 6  ;;  %s204_s18 = scalar_lea.sflag [#allocation6], %s1129_s25 }
  0x3a   : > { %s207_s19 = scalar_lea.vmem [#allocation5], %s712_s5 }
  0x3b   : > { %968 = dma.done.wait (%p1068_p8), %s204_s18, 1024  }
  0x3c   : > { %970 = vsyncadd (%p1068_p8), %s204_s18, 4294966272  ;;  %v238_v0 = vld [vmem:[%s207_s19 + $0x8] sm:$0xff]  ;;  %v717_v1 = vld [vmem:[%s207_s19 + $0x18] sm:$0xff]  ;;  %vm239_vm0 = vcmask 130048   ;;  %vm321_vm1 = vcmask 261120   ;;  %s232_s21 = scalar_lea.vmem [#allocation7], %s712_s5 }
  0x3d   : > { %v237_v2 = vld [vmem:[%s207_s19] sm:$0xff]  ;;  %758 = vmatprep.subr.mxu0 %v238_v0  ;;  %765 = vmatprep.subr.mxu1 %v717_v1  ;;  %v716_v3 = vld [vmem:[%s207_s19 + $0x10] sm:$0xff]  ;;  %v236_v5 = vld [vmem:[%s198_s28 + $0x8] sm:$0xff]  ;;  %s585_s27 = sshll.u32 %s232_s21, 4  ;;  %s741_s29 = sshll.u32 %s989_s12, 10  ;;  %s1160_s27 = int_to_ptr.vmem [resolvable:$true] %s585_s27 }
  0x3e   : > { %v235_v4 = vld [vmem:[%s198_s28] sm:$0xff]  ;;  %759 = vmatpush3.msra.mxu0 %v238_v0  ;;  %766 = vmatpush3.msra.mxu1 %v717_v1  ;;  %v723_v6 = vld [vmem:[%s207_s19 + $0x28] sm:$0xff]  ;;  %v729_v7 = vld [vmem:[%s207_s19 + $0x38] sm:$0xff]  ;;  %s1165_s8 = scalar_lea.hbm %s1219_s2, %s741_s29  ;;  %s568_s12 = scalar_lea.sflag [#allocation4], %s1129_s25 }
  0x3f   : > { %760 = vmatprep.subr.mxu0 %v237_v2  ;;  %767 = vmatprep.subr.mxu1 %v716_v3  ;;  %v722_v8 = vld [vmem:[%s207_s19 + $0x20] sm:$0xff]  ;;  %v728_v9 = vld [vmem:[%s207_s19 + $0x30] sm:$0xff]  ;;  %s913_s15 = scalar_lea.vmem %s1160_s27, 1024  ;;  %s1003_s16 = smov [#allocation7]  }
  0x40   : > { %761 = vmatpush3.msra.mxu0 %v237_v2  ;;  %762 = vmatprep.mubr.msk.f32.mxu0 %vm239_vm0, %v235_v4  ;;  %p914_p8 = scmp.ne.s32.totalorder %s1160_s27, %s913_s15  ;;  %s917_s30 = sshll.u32 %s1003_s16, 4  ;;  %s918_s30 = int_to_ptr.vmem [resolvable:$false] %s917_s30 }
  0x41   : > { %768 = vmatpush3.msra.mxu1 %v716_v3  ;;  %769 = vmatprep.mubr.msk.f32.mxu1 %vm239_vm0, %v235_v4  ;;  %s919_s4 = scalar_lea.vmem %s918_s30, 2048  ;;  %p920_p5 = scmp.lt.s32.totalorder %s1160_s27, %s918_s30 }
  0x42   : > { %763 = vmatmul.mubr.msk.f32.vlgmr.msra.gmra.mxu0 %vm239_vm0, %v236_v5  ;;  %770 = vmatmul.mubr.msk.f32.vlgmr.msra.gmra.mxu1 %vm239_vm0, %v236_v5  ;;  %p915_p0 = pnand %p914_p8, %p1072_p9  ;;  %p921_p6 = scmp.lt.s32.totalorder %s919_s4, %s913_s15 }
  0x43   : > { %772 = vmatprep.subr.mxu0 %v723_v6  ;;  %779 = vmatprep.subr.mxu1 %v729_v7 }
  0x44   : > { %773 = vmatpush3.msra.mxu0 %v723_v6  ;;  %780 = vmatpush3.msra.mxu1 %v729_v7  ;;  %p916_p2 = pneg %p915_p0  ;;  %p922_p4 = por %p921_p6, %p920_p5 }
  0x45   : > { %774 = vmatprep.subr.mxu0 %v722_v8  ;;  %781 = vmatprep.subr.mxu1 %v728_v9 }
  0x46   : > { %775 = vmatpush3.msra.mxu0 %v722_v8  ;;  %776 = vmatprep.mubr.msk.f32.mxu0 %vm239_vm0, %v235_v4  ;;  %p923_p7 = pnand %p922_p4, %p916_p2 }
  0x47   : > { %782 = vmatpush3.msra.mxu1 %v728_v9  ;;  %783 = vmatprep.mubr.msk.f32.mxu1 %vm239_vm0, %v235_v4 }
  0x48   : > { %777 = vmatmul.mubr.msk.f32.vlgmr.msra.gmra.mxu0 %vm239_vm0, %v236_v5  ;;  %784 = vmatmul.mubr.msk.f32.vlgmr.msra.gmra.mxu1 %vm239_vm0, %v236_v5 }
 0x102   : > { %v764_v10 = vpop.f32.mrf.mxu0  ;;  %v771_v11 = vpop.f32.mrf.mxu1 }
 0x103   : > { %323 = vst.msk [vmem:[%s232_s21 + $0x8] sm:$0xff] %vm321_vm1, %v764_v10  ;;  %721 = vst.msk [vmem:[%s232_s21 + $0x18] sm:$0xff] %vm321_vm1, %v771_v11 }
 0x104   : > { %v312_v12 = vpop.f32.mrf.mxu0  ;;  %v393_v13 = vpop.f32.mrf.mxu1 }
 0x105   : > { %322 = vst.msk [vmem:[%s232_s21] sm:$0xff] %vm321_vm1, %v312_v12  ;;  %720 = vst.msk [vmem:[%s232_s21 + $0x10] sm:$0xff] %vm321_vm1, %v393_v13 }
 0x108   : > { %v778_v14 = vpop.f32.mrf.mxu0  ;;  %v785_v15 = vpop.f32.mrf.mxu1 }
 0x109   : > { %727 = vst.msk [vmem:[%s232_s21 + $0x28] sm:$0xff] %vm321_vm1, %v778_v14  ;;  %733 = vst.msk [vmem:[%s232_s21 + $0x38] sm:$0xff] %vm321_vm1, %v785_v15 }
 0x10a   : > { %v474_v16 = vpop.f32.mrf.mxu0  ;;  %v555_v17 = vpop.f32.mrf.mxu1 }
 0x10b   : > { %726 = vst.msk [vmem:[%s232_s21 + $0x20] sm:$0xff] %vm321_vm1, %v474_v16  ;;  %732 = vst.msk [vmem:[%s232_s21 + $0x30] sm:$0xff] %vm321_vm1, %v555_v17 }
 0x10c   : > { %926 = shalt.err (!%p923_p7)
}
 0x10d   : > { %s927_s6 = scalar_lea.hbm %s1165_s8, 1024  ;;  %s931_s28 = scalar_lea.hbm %s1219_s2, 2048 }
 0x10e   : > { %p928_p1 = scmp.ne.s32.totalorder %s1165_s8, %s927_s6  ;;  %p932_p3 = scmp.lt.s32.totalorder %s1165_s8, %s1219_s2 }
 0x10f   : > { %p933_p8 = scmp.lt.s32.totalorder %s931_s28, %s927_s6 }
 0x110   : > { %p929_p10 = pnand %p928_p1, %p1072_p9 }
 0x111   : > { %p934_p0 = por %p933_p8, %p932_p3 }
 0x112   : > { %p930_p13 = pneg %p929_p10 }
 0x114   : > { %p935_p2 = pnand %p934_p0, %p930_p13 }
 0x116   : > { %938 = shalt.err (!%p935_p2)
}
 0x117   : > { %s1004_s19 = smov 128   ;;  %s1005_s21 = smov 8  }
 0x118   : > { %790 = dma.vmem_to_hbm [thread:$0]  (%p1072_p9), %s1160_s27, 1024, %s1165_s8, %s568_s12, %s1004_s19, %s1004_s19, %s1005_s21  }
 0x119 PF: > { %s600_s29 = sand.u32 1, %s977_s9   ;;  %p800_p5 = pnand %p703_p12, %p1079_p11 }
 0x11a   : > { %s601_s3 = scalar_lea.sflag [#allocation4], %s600_s29 }
 0x11b   : > { %p801_p6 = pneg %p800_p5 }
 0x11d   : > { %972 = dma.done.wait (%p801_p6), %s601_s3, 1024  }
 0x11e   : > { %974 = vsyncadd (%p801_p6), %s601_s3, 4294966272  ;;  %s21_s14 = sadd.s32 1, %s997_s14   ;;  %s1226_s9 = smov %s981_s10 }
 0x11f   : > { %p18_p4 = scmp.ge.s32.totalorder %s21_s14, 4   ;;  %s1227_s10 = smov %s985_s11 }
 0x120   : > { %s1228_s11 = smov %s1077_s23  ;;  %s1229_s12 = smov %s993_s13 }
 0x121   : > { %s1230_s13 = smov %s1232_s17  ;;  %20 = sbr.rel (!%p18_p4) target bundleno = 8 (0x8), region = 92 }
 0x126   :  { %606 = vsyncpa [#allocation3], 1 }
 0x127   :  { %608 = vsyncpa [#allocation3 + $0x1], 1 }
 0x128   :  { %609 = vsyncpa [#allocation6], 1 }
 0x129   :  { %611 = vsyncpa [#allocation6 + $0x1], 1 }
 0x12a   :  { %612 = vsyncpa [#allocation4], 1 }
 0x12b   :  { %614 = vsyncpa [#allocation4 + $0x1], 1 }

</bundles_post_ra>
